<compile_context>
chip_gen: v6e
topology: v6e:2x2x1
jax: 0.10.0
libtpu: 0.0.40
codegen_flags: <defaults>
</compile_context>

<pallas_src>
import math

import jax
import jax.numpy as jnp
from jax import lax
from jax.experimental import pallas as pl
from jax.experimental.pallas import tpu as pltpu


# --------------------------------------------------------------------------- #
# Kernel A: fused QKV projection (K/V computed once, scale folded into W_q)    #
# --------------------------------------------------------------------------- #
def _qkv_proj_kernel(x_ref, w_ref, b_ref, qkv_ref):
    """x_ref: (ts, D) f32 | w_ref: (D, 3D) bf16 | b_ref: (1, 3D) f32 | qkv_ref: (ts, 3D) bf16."""
    x = x_ref[...].astype(jnp.bfloat16)
    y = jnp.dot(x, w_ref[...], preferred_element_type=jnp.float32) + b_ref[...]
    qkv_ref[...] = y.astype(qkv_ref.dtype)


# --------------------------------------------------------------------------- #
# Kernel B: masked softmax attention + fused concat-heads/output projection    #
# --------------------------------------------------------------------------- #
def _attn_kernel(q_ref, kt_ref, v_ref, mask_ref, wo_ref, bo_ref, out_ref, acc_ref):
    """One grid step = (batch b, q-tile qt, head h); head is the innermost reduction axis.

    q_ref:    (tq, hd)          bf16, 1/sqrt(head_dim) already folded in
    kt_ref:   (hd, S)           bf16 (K pre-transposed -> no in-kernel transpose)
    v_ref:    (S,  hd)          bf16
    mask_ref: (tq, S)           int8, 0 = masked position
    wo_ref:   (n_heads, hd, D)  bf16, resident in VMEM (constant index_map)
    bo_ref:   (1, D)            f32
    out_ref:  (tq, D)
    acc_ref:  (tq, D)           f32 scratch, accumulates sum_h ctx_h @ W_o[h]
    """
    head = pl.program_id(2)
    n_heads = pl.num_programs(2)

    @pl.when(head == 0)
    def _init():
        acc_ref[...] = jnp.zeros_like(acc_ref)

    # Scores on the MXU (bf16 operands, f32 accumulation); canonical layout, no transpose.
    s = jnp.dot(q_ref[...], kt_ref[...], preferred_element_type=jnp.float32)   # (tq, S)
    # masked_fill(mask == 0, -1e9) applied inline — VPU work hidden under MXU slack.
    s = jnp.where(mask_ref[...] == 0, jnp.float32(-1e9), s)

    # Numerically stable softmax; statistics in f32; normalization deferred past the
    # PV matmul (tq*head_dim multiplies instead of tq*S), reciprocal on the EUP.
    s = s - jnp.max(s, axis=-1, keepdims=True)
    p = jnp.exp(s)
    denom = jnp.sum(p, axis=-1, keepdims=True)                                  # (tq, 1)

    ctx = jnp.dot(p.astype(jnp.bfloat16), v_ref[...],
                  preferred_element_type=jnp.float32)                           # (tq, hd)
    ctx = ctx * pl.reciprocal(denom, approx=True)

    # Fused "concat heads -> output projection": out = sum_h ctx_h @ W_o.T[h*hd:(h+1)*hd, :]
    wo_h = wo_ref[head]                                                         # (hd, D)
    acc_ref[...] += jnp.dot(ctx.astype(jnp.bfloat16), wo_h,
                            preferred_element_type=jnp.float32)

    @pl.when(head == n_heads - 1)
    def _finalize():
        out_ref[...] = (acc_ref[...] + bo_ref[...]).astype(out_ref.dtype)


def _pick_tile(s, target):
    """Largest multiple-of-8 divisor of s that is <= target (graceful fallback: s)."""
    if s <= target:
        return s
    for cand in range(target - target % 8, 7, -8):
        if s % cand == 0:
            return cand
    return s


def multi_head_attention(x, mask, params, *, n_heads, q_tile=256):
    """Forward pass matching MultiHeaderAttention.forward.

    x: (B, S, D) f32; mask: (B, S, S) with 0 = masked (or None); params in PyTorch
    nn.Linear layout: w_* is (out_features, in_features), b_* is (d_model,).
    """
    b, s, d = x.shape
    head_dim = d // n_heads
    assert head_dim * n_heads == d, "d_model must be divisible by n_heads"

    if mask is None:
        mask = jnp.ones((b, s, s), jnp.int8)
    mask_i8 = (mask != 0).astype(jnp.int8)                   # 4x less HBM than int32

    scale = 1.0 / math.sqrt(head_dim)

    # ---- host-side weight prep (layout only; nn.Linear weight is (out, in)) -------------
    w_qkv = jnp.concatenate(
        [params["w_q"].T * scale, params["w_k"].T, params["w_v"].T], axis=1
    ).astype(jnp.bfloat16)                                                   # (D, 3D)
    b_qkv = jnp.concatenate(
        [params["b_q"].reshape(1, d) * scale,
         params["b_k"].reshape(1, d),
         params["b_v"].reshape(1, d)], axis=1).astype(jnp.float32)           # (1, 3D)
    wo = params["w_o"].T.reshape(n_heads, head_dim, d).astype(jnp.bfloat16)  # (n, hd, D)
    bo = params["b_o"].reshape(1, d).astype(jnp.float32)                     # (1, D)

    tq = _pick_tile(s, q_tile)
    n_qt = s // tq

    # ---------------- Kernel A: fused QKV projection -------------------------------------
    qkv = pl.pallas_call(
        _qkv_proj_kernel,
        out_shape=jax.ShapeDtypeStruct((b, s, 3 * d), jnp.bfloat16),
        grid_spec=pltpu.PrefetchScalarGridSpec(
            num_scalar_prefetch=0,
            grid=(b, n_qt),
            in_specs=[
                pl.BlockSpec((None, tq, d), lambda bi, si: (bi, si, 0)),       # x tile
                pl.BlockSpec((d, 3 * d), lambda bi, si: (0, 0)),               # W_qkv (resident)
                pl.BlockSpec((1, 3 * d), lambda bi, si: (0, 0)),               # b_qkv
            ],
            out_specs=pl.BlockSpec((None, tq, 3 * d), lambda bi, si: (bi, si, 0)),
        ),
        compiler_params=pltpu.CompilerParams(
            dimension_semantics=("parallel", "parallel")),
    )(x, w_qkv, b_qkv)

    # ---- XLA layout plumbing: split heads, emit K already transposed --------------------
    qkv = qkv.reshape(b, s, 3, n_heads, head_dim)
    q = jnp.transpose(qkv[:, :, 0], (0, 2, 1, 3))            # (B, n, S, hd) bf16
    kt = jnp.transpose(qkv[:, :, 1], (0, 2, 3, 1))           # (B, n, hd, S) bf16
    v = jnp.transpose(qkv[:, :, 2], (0, 2, 1, 3))            # (B, n, S, hd) bf16

    # ---------------- Kernel B: attention + fused output projection ----------------------
    return pl.pallas_call(
        _attn_kernel,
        out_shape=jax.ShapeDtypeStruct((b, s, d), x.dtype),
        grid_spec=pltpu.PrefetchScalarGridSpec(
            num_scalar_prefetch=0,
            grid=(b, n_qt, n_heads),
            in_specs=[
                pl.BlockSpec((None, None, tq, head_dim),
                             lambda bi, qi, hi: (bi, hi, qi, 0)),              # Q tile
                pl.BlockSpec((None, None, head_dim, s),
                             lambda bi, qi, hi: (bi, hi, 0, 0)),               # K^T (full seq)
                pl.BlockSpec((None, None, s, head_dim),
                             lambda bi, qi, hi: (bi, hi, 0, 0)),               # V (full seq)
                pl.BlockSpec((None, tq, s), lambda bi, qi, hi: (bi, qi, 0)),   # mask (int8)
                pl.BlockSpec((n_heads, head_dim, d),
                             lambda bi, qi, hi: (0, 0, 0)),                    # W_o (resident)
                pl.BlockSpec((1, d), lambda bi, qi, hi: (0, 0)),               # b_o
            ],
            out_specs=pl.BlockSpec((None, tq, d), lambda bi, qi, hi: (bi, qi, 0)),
            scratch_shapes=[pltpu.VMEM((tq, d), jnp.float32)],                 # head accumulator
        ),
        compiler_params=pltpu.CompilerParams(
            dimension_semantics=("parallel", "parallel", "arbitrary")),
    )(q, kt, v, mask_i8, wo, bo)


# --------------------------------------------------------------------------- #
# Reference (pure JAX, pinned to true-f32 matmuls) and parameter init          #
# --------------------------------------------------------------------------- #
def _xavier_uniform(key, out_f, in_f):
    bound = math.sqrt(6.0 / (in_f + out_f))
    return jax.random.uniform(key, (out_f, in_f), jnp.float32, -bound, bound)


def init_params(key, d_model):
    ks = jax.random.split(key, 4)
    zb = jnp.zeros((d_model,), jnp.float32)
    return {
        "w_q": _xavier_uniform(ks[0], d_model, d_model), "b_q": zb,
        "w_k": _xavier_uniform(ks[1], d_model, d_model), "b_k": zb,
        "w_v": _xavier_uniform(ks[2], d_model, d_model), "b_v": zb,
        "w_o": _xavier_uniform(ks[3], d_model, d_model), "b_o": zb,
    }


def reference_mha(x, mask, params, *, n_heads):
    """Pure-JAX reference identical to the PyTorch forward, at HIGHEST matmul precision."""
    hp = lax.Precision.HIGHEST
    b, s, d = x.shape
    h = d // n_heads
    q = jnp.dot(x, params["w_q"].T, precision=hp) + params["b_q"]
    k = jnp.dot(x, params["w_k"].T, precision=hp) + params["b_k"]
    v = jnp.dot(x, params["w_v"].T, precision=hp) + params["b_v"]
    q = q.reshape(b, s, n_heads, h).transpose(0, 2, 1, 3)
    k = k.reshape(b, s, n_heads, h).transpose(0, 2, 1, 3)
    v = v.reshape(b, s, n_heads, h).transpose(0, 2, 1, 3)
    qk = jnp.einsum("bnqh,bnkh->bnqk", q, k, precision=hp) / math.sqrt(h)
    qk = jnp.where(mask[:, None, :, :] == 0, -1e9, qk)
    p = jax.nn.softmax(qk, axis=-1)
    ctx = jnp.einsum("bnqk,bnkh->bnqh", p, v, precision=hp)
    ctx = ctx.transpose(0, 2, 1, 3).reshape(b, s, d)
    return jnp.dot(ctx, params["w_o"].T, precision=hp) + params["b_o"]


if __name__ == "__main__":
    B, S, D_MODEL, N_HEADS = 2, 8, 32, 4

    key = jax.random.PRNGKey(0)
    k_x, k_p = jax.random.split(key)

    x = jax.random.normal(k_x, (B, S, D_MODEL), jnp.float32)
    # causal mask (B, S, S): 1 = attend, 0 = masked
    mask = jnp.broadcast_to(jnp.tril(jnp.ones((S, S), jnp.int32)), (B, S, S))

    params = init_params(k_p, D_MODEL)

    out = multi_head_attention(x, mask, params, n_heads=N_HEADS)
    out = jax.block_until_ready(out)
    assert out.shape == (B, S, D_MODEL)

    ref = reference_mha(x, mask, params, n_heads=N_HEADS)
    # Tolerance rationale: kernel MXU operands are explicitly bf16 (per perf guidance) with
    # f32 accumulation + f32 softmax stats + EUP approx reciprocal; vs. the HIGHEST-precision
    # f32 reference the worst-element error at these scales is O(1e-3..1e-2) on O(1) outputs.
    assert jnp.allclose(out, ref, atol=3e-2, rtol=3e-2), "mismatch vs reference"

    # TODO(synk): forward_with_kv_cache (dynamic KV-cache concat) not implemented in-kernel.
    print("KERNEL_OK")
</pallas_src>

<mosaic_0001>
module attributes {stable_mosaic.version = 11 : i64} {
  func.func @_qkv_proj_kernel(%arg0: i32, %arg1: i32, %arg2: memref<1x8x32xf32, #tpu.memory_space<vmem>>, %arg3: memref<32x96xbf16, #tpu.memory_space<vmem>>, %arg4: memref<1x96xf32, #tpu.memory_space<vmem>>, %arg5: memref<1x8x96xbf16, #tpu.memory_space<vmem>>) attributes {dimension_semantics = [#tpu.dimension_semantics<parallel>, #tpu.dimension_semantics<parallel>], iteration_bounds = array<i64: 2, 1>, scalar_prefetch = 0 : i64, scratch_operands = 0 : i64, tpu.core_type = #tpu.core_type<tc>, window_params = [{transform_indices = @transform_0, window_bounds = array<i64: 1, 8, 32>}, {pipeline_mode = #tpu.pipeline_mode<synchronous>, transform_indices = @transform_1, window_bounds = array<i64: 32, 96>}, {pipeline_mode = #tpu.pipeline_mode<synchronous>, transform_indices = @transform_2, window_bounds = array<i64: 1, 96>}, {transform_indices = @transform_3, window_bounds = array<i64: 1, 8, 96>}]} {
    %c0 = arith.constant 0 : index
    %c0_0 = arith.constant 0 : index
    %c0_1 = arith.constant 0 : index
    %0 = vector.load %arg2[%c0, %c0_0, %c0_1] : memref<1x8x32xf32, #tpu.memory_space<vmem>>, vector<1x8x32xf32>
    %1 = vector.shape_cast %0 : vector<1x8x32xf32> to vector<8x32xf32>
    %2 = arith.truncf %1 : vector<8x32xf32> to vector<8x32xbf16>
    %c0_2 = arith.constant 0 : index
    %c0_3 = arith.constant 0 : index
    %3 = vector.load %arg3[%c0_2, %c0_3] : memref<32x96xbf16, #tpu.memory_space<vmem>>, vector<32x96xbf16>
    %cst = arith.constant dense<0.000000e+00> : vector<8x96xf32>
    %4 = tpu.matmul %2, %3, %cst {dimension_numbers = #tpu.dot_dimension_numbers<[1], [0], [0], [1], [0, 0, 1, 1], [], []>} : vector<8x32xbf16>, vector<32x96xbf16>, vector<8x96xf32> -> vector<8x96xf32>
    %c0_4 = arith.constant 0 : index
    %c0_5 = arith.constant 0 : index
    %5 = vector.load %arg4[%c0_4, %c0_5] : memref<1x96xf32, #tpu.memory_space<vmem>>, vector<1x96xf32>
    %6 = vector.broadcast %5 : vector<1x96xf32> to vector<8x96xf32>
    %7 = arith.addf %4, %6 : vector<8x96xf32>
    %8 = arith.truncf %7 : vector<8x96xf32> to vector<8x96xbf16>
    %c0_6 = arith.constant 0 : index
    %c0_7 = arith.constant 0 : index
    %c0_8 = arith.constant 0 : index
    %9 = vector.load %arg5[%c0_6, %c0_7, %c0_8] : memref<1x8x96xbf16, #tpu.memory_space<vmem>>, vector<1x8x96xbf16>
    %10 = vector.shape_cast %9 : vector<1x8x96xbf16> to vector<8x96xbf16>
    %11 = vector.shape_cast %8 : vector<8x96xbf16> to vector<1x8x96xbf16>
    tpu.vector_store %arg5[%c0_6, %c0_7, %c0_8], %11 {strides = array<i32>} : memref<1x8x96xbf16, #tpu.memory_space<vmem>>, vector<1x8x96xbf16>,
    return
  }
  func.func @transform_0(%arg0: i32, %arg1: i32) -> (i32, i32, i32) {
    %c0_i32 = arith.constant 0 : i32
    %c0_i32_0 = arith.constant 0 : i32
    return %arg0, %arg1, %c0_i32 : i32, i32, i32
  }
  func.func @transform_1(%arg0: i32, %arg1: i32) -> (i32, i32) {
    %c0_i32 = arith.constant 0 : i32
    %c0_i32_0 = arith.constant 0 : i32
    %c0_i32_1 = arith.constant 0 : i32
    return %c0_i32, %c0_i32_0 : i32, i32
  }
  func.func @transform_2(%arg0: i32, %arg1: i32) -> (i32, i32) {
    %c0_i32 = arith.constant 0 : i32
    %c0_i32_0 = arith.constant 0 : i32
    %c0_i32_1 = arith.constant 0 : i32
    return %c0_i32, %c0_i32_0 : i32, i32
  }
  func.func @transform_3(%arg0: i32, %arg1: i32) -> (i32, i32, i32) {
    %c0_i32 = arith.constant 0 : i32
    %c0_i32_0 = arith.constant 0 : i32
    return %arg0, %arg1, %c0_i32 : i32, i32, i32
  }
}

</mosaic_0001>

<bundles_post_ra>
// kernel: tpu_custom_call.1
= control target key start
LH: loop header
LB: loop body
LE: loop exit
PB: predicated region body
PF: predicated region fallthrough
CT: control target
= control target key end

     0   :  { %8 = vsyncpa [#allocation3], 0  ;;  %s855_s0 = inlined_call_operand.hbm [shape: f32[2,8,32], index: 0, kind: input, shape index: {}]   ;;  %s856_s1 = inlined_call_operand.hbm [shape: bf16[32,96], index: 1, kind: input, shape index: {}]   ;;  %s857_s2 = inlined_call_operand.vmem [shape: f32[1,96], index: 2, kind: input, shape index: {}]   ;;  %s858_s3 = inlined_call_operand.hbm [shape: bf16[2,8,96], index: 3, kind: output, shape index: {}]  }
   0x1   :  { %10 = vsyncpa [#allocation3 + $0x1], 0 }
   0x2   :  { %11 = vsyncpa [#allocation6], 0 }
   0x3   :  { %12 = vsyncpa [#allocation4], 0 }
   0x4   :  { %14 = vsyncpa [#allocation4 + $0x1], 0  ;;  %s672_s12 = smov 0   ;;  %s674_s13 = smov 0  }
   0x5   :  { %s676_s14 = smov 0   ;;  %s678_s15 = smov 0  }
   0x6   :  { %s680_s16 = smov 0   ;;  %s682_s17 = smov 0  }
   0x7 LB: > { %s396_s18 = sadd.s32 4294967295, %s643_s17   ;;  %s397_s19 = sadd.s32 4294967294, %s643_s17   ;;  %s643_s17 = sphi %s682_s17, %s20_s17   ;;  %s639_s16 = sphi %s680_s16, %s876_s16   ;;  %s635_s15 = sphi %s678_s15, %s875_s15   ;;  %s631_s14 = sphi %s676_s14, %s874_s14   ;;  %s627_s13 = sphi %s674_s13, %s873_s13   ;;  %s623_s12 = sphi %s672_s12, %s872_s12  }
   0x8   : > { %p54_p0 = scmp.ne.s32.totalorder %s627_s13, %s623_s12  ;;  %p706_p1 = scmp.eq.s32.totalorder %s396_s18, 0 }
   0x9   : > { %p710_p2 = scmp.eq.s32.totalorder %s396_s18, 1  ;;  %p128_p3 = scmp.eq.s32.totalorder %s397_s19, 1 }
   0xa   : > { %p716_p4 = por %p706_p1, %p54_p0  ;;  %p398_p5 = scmp.ge.s32.totalorder %s643_s17, 1 }
   0xb   : > { %p721_p6 = por %p128_p3, %p54_p0  ;;  %p135_p7 = scmp.lt.s32.totalorder %s643_s17, 3 }
   0xc   : > { %s862_s22 = scalar_select %p716_p4, 1, 0 }
   0xd   : > { %s863_s23 = scalar_select %p721_p6, 1, 0 }
   0xe   : > { %p726_p8 = pnand %p398_p5, %p135_p7  ;;  %s645_s25 = smov [#allocation5]  }
   0xf   : > { %s147_s26 = sshll.u32 %s645_s25, 4  ;;  %s32_s28 = sadd.s32 1, %s639_s16  ;;  %s148_s26 = int_to_ptr.vmem [resolvable:$true] %s147_s26 }
  0x10   : > { %p434_p9 = pneg %p726_p8  ;;  %s516_s29 = scalar_lea.vmem %s148_s26, 256 }
  0x11   : > { %p517_p13 = scmp.ne.s32.totalorder %s148_s26, %s516_s29  ;;  %p524_p5 = scmp.lt.s32.totalorder %s148_s26, %s148_s26 }
  0x12   : > { %p735_p11 = pnand %p434_p9, %p706_p1  ;;  %p525_p7 = scmp.lt.s32.totalorder %s516_s29, %s516_s29 }
  0x14   : > { %p507_p12 = pneg %p735_p11  ;;  %p526_p6 = por %p525_p7, %p524_p5 }
  0x16   : > { %p519_p0 = pnand %p517_p13, %p507_p12 }
  0x18   : > { %p520_p3 = pneg %p519_p0 }
  0x1a   : > { %p527_p4 = pnand %p526_p6, %p520_p3 }
  0x1c   : > { %530 = shalt.err (!%p527_p4)
}
  0x1d   : > { %s646_s30 = smov 64   ;;  %s647_s4 = smov 4  }
  0x1e   : > { %437 = dma.hbm_to_vmem [thread:$0]  (!%p735_p11), %s856_s1, 256, %s148_s26, [#allocation6], %s646_s30, %s646_s30, %s647_s4  }
  0x1f   : > { %p34_p6 = scmp.ge.s32.totalorder %s32_s28, 2  ;;  %s41_s7 = sadd.s32 1, %s631_s14 }
  0x20   : > { %p48_p4 = scmp.ne.s32.totalorder %s631_s14, %s627_s13  ;;  %p49_p9 = scmp.eq.s32.totalorder %s643_s17, 0 }
  0x21   : > { %s878_s28 = smov (%p34_p6, %s32_s28), 0  ;;  %p447_p0 = scmp.lt.s32.totalorder %s643_s17, 2 }
  0x22   : > { %p753_p12 = por %p49_p9, %p48_p4  ;;  %p759_p13 = por %p710_p2, %p48_p4 }
  0x23   : > { %s36_s10 = ssub.s32 %s639_s16, %s878_s28  ;;  %s164_s11 = sand.u32 1, %s631_s14  }
  0x24   : > { %p39_p11 = scmp.eq.s32.totalorder %s36_s10, 0  ;;  %s401_s18 = sshll.u32 %s164_s11, 3 }
  0x25   : > { %s402_s25 = sshll.u32 %s639_s16, 7  ;;  %s168_s30 = scalar_lea.vmem [#allocation2], %s401_s18 }
  0x26   : > { %s768_s19 = scalar_select %p39_p11, %s631_s14, %s41_s7  }
  0x27   : > { %s174_s29 = scalar_lea.hbm %s855_s0, %s402_s25  ;;  %s176_s4 = sshll.u32 %s168_s30, 4  ;;  %s177_s4 = int_to_ptr.vmem [resolvable:$true] %s176_s4 }
  0x28   : > { %p776_p2 = pnand %p447_p0, %p753_p12  ;;  %s165_s5 = scalar_lea.sflag [#allocation3], %s164_s11 }
  0x29   : > { %s544_s6 = scalar_lea.vmem %s177_s4, 128  ;;  %s648_s7 = smov [#allocation2]  }
  0x2a   : > { %p533_p3 = pneg %p776_p2  ;;  %p545_p5 = scmp.ne.s32.totalorder %s177_s4, %s544_s6 }
  0x2b   : > { %s549_s10 = sshll.u32 %s648_s7, 4  ;;  %s550_s10 = int_to_ptr.vmem [resolvable:$false] %s549_s10 }
  0x2c   : > { %p547_p7 = pnand %p545_p5, %p533_p3  ;;  %s551_s25 = scalar_lea.vmem %s550_s10, 256 }
  0x2d   : > { %p552_p4 = scmp.lt.s32.totalorder %s177_s4, %s550_s10  ;;  %p553_p9 = scmp.lt.s32.totalorder %s551_s25, %s544_s6 }
  0x2e   : > { %p548_p6 = pneg %p547_p7 }
  0x2f   : > { %p554_p11 = por %p553_p9, %p552_p4 }
  0x31   : > { %p555_p10 = pnand %p554_p11, %p548_p6 }
  0x33   : > { %558 = shalt.err (!%p555_p10)
}
  0x34   : > { %441 = dma.hbm_to_vmem [thread:$0]  (!%p776_p2), %s174_s29, 128, %s177_s4, %s165_s5  }
  0x35   : > { %185 = sbr.rel (%p726_p8) target bundleno = 281 (0x119), region = 32  ;;  %s787_s8 = sand.u32 (!%p726_p8), 1, %s627_s13  }
  0x36   : > { %s404_s11 = sshll.u32 (!%p726_p8), %s787_s8, 3  ;;  %s188_s18 = scalar_lea.sflag (!%p726_p8), [#allocation3], %s787_s8 }
  0x37   : > { %s191_s26 = scalar_lea.vmem (!%p726_p8), [#allocation2], %s404_s11  ;;  %p869_p12 = scmp.ne.s32.totalorder (!%p726_p8), %s862_s22, 0 }
  0x3a   : > { %610 = dma.done.wait (%p869_p12), %s188_s18, 128  }
  0x3b   : > { %612 = vsyncadd (%p869_p12), %s188_s18, 4294967168 }
  0x3c   : > { %614 = dma.done.wait (%p706_p1), [#allocation6], 256  }
  0x3d   : > { %616 = vsyncadd (%p706_p1), [#allocation6], 4294967040  ;;  %v649_v0 = vmov 0.0   ;;  %vm650_vm0 = vmmov 0   ;;  %v503_v1 = vld [vmem:[#allocation5 + $0x8] sm:$0xff]   ;;  %v504_v2 = vld [vmem:[#allocation5] sm:$0xff]  }
  0x3e   : > { %418 = vmatprep.subr.bf16.mxu0 %v649_v0  ;;  %422 = vmatprep.mubr.msk.bf16.mxu0 %vm650_vm0, %v649_v0  ;;  %v219_v3 = vld [vmem:[%s191_s26] sm:$0xff]  ;;  %vm244_vm1 = vcmask 261120   ;;  %s406_s22 = sshll.u32 %s787_s8, 2  ;;  %s412_s27 = sshll.u32 %s635_s15, 6  ;;  %vm289_vm2 = vcmask 781312  }
  0x3f   : > { %419 = vmatpush3.bf16.msra.mxu0 %v503_v1  ;;  %v220_v4 = vpack.c.bf16 %v219_v3, %v219_v3  ;;  %v407_v5 = vld [vmem:[%s857_s2] ss:$0 sm:$0xff]  ;;  %s217_s29 = scalar_lea.vmem [#allocation7], %s406_s22  ;;  %s807_s5 = scalar_lea.hbm %s858_s3, %s412_s27 }
  0x40   : > { %420 = vmatprep.subr.bf16.mxu0 %v649_v0  ;;  %s306_s30 = sshll.u32 %s217_s29, 4  ;;  %s292_s15 = scalar_lea.sflag [#allocation4], %s787_s8  ;;  %s809_s30 = int_to_ptr.vmem [resolvable:$true] %s306_s30 }
  0x41   : > { %s559_s6 = scalar_lea.vmem %s809_s30, 64  ;;  %s651_s7 = smov [#allocation7]  }
  0x42   : > { %p560_p1 = scmp.ne.s32.totalorder %s809_s30, %s559_s6  ;;  %s563_s10 = sshll.u32 %s651_s7, 4  ;;  %s564_s10 = int_to_ptr.vmem [resolvable:$false] %s563_s10 }
  0x43   : > { %421 = vmatpush3.bf16.msra.mxu0 %v504_v2  ;;  %s565_s25 = scalar_lea.vmem %s564_s10, 128  ;;  %p566_p0 = scmp.lt.s32.totalorder %s809_s30, %s564_s10 }
  0x44   : > { %p561_p8 = pnand %p560_p1, %p759_p13  ;;  %p567_p2 = scmp.lt.s32.totalorder %s565_s25, %s559_s6 }
  0x46   : > { %423 = vmatmul.mubr.msk.bf16.vlgmr.msra.gmra.mxu0 %vm244_vm1, %v220_v4  ;;  %p562_p10 = pneg %p561_p8  ;;  %p568_p3 = por %p567_p2, %p566_p0 }
  0x48   : > { %p569_p5 = pnand %p568_p3, %p562_p10 }
 0x106   : > { %v282_v6 = vpop.f32.mrf.mxu0 }
 0x107   : > { %v283_v7 = vadd.f32 %v407_v5, %v282_v6 }
 0x108   : > { %v424_v8 = vpop.f32.mrf.mxu0 }
 0x109   : > { %v288_v9 = vpack.c.bf16 %v283_v7, %v283_v7 }
 0x10a   : > { %v285_v10 = vpop.f32.mrf.mxu0 }
 0x10b   : > { %290 = vst.msk [vmem:[%s217_s29] sm:$0xf] %vm289_vm2, %v288_v9 }
 0x10c   : > { %v425_v11 = vpop.f32.mrf.mxu0 }
 0x10d   : > { %572 = shalt.err (!%p569_p5)
}
 0x10e   : > { %s573_s11 = scalar_lea.hbm %s807_s5, 64  ;;  %s577_s26 = scalar_lea.hbm %s858_s3, 128 }
 0x10f   : > { %p574_p7 = scmp.ne.s32.totalorder %s807_s5, %s573_s11  ;;  %p578_p9 = scmp.lt.s32.totalorder %s807_s5, %s858_s3 }
 0x110   : > { %p579_p11 = scmp.lt.s32.totalorder %s577_s26, %s573_s11 }
 0x111   : > { %p575_p6 = pnand %p574_p7, %p759_p13 }
 0x112   : > { %p580_p12 = por %p579_p11, %p578_p9 }
 0x113   : > { %p576_p4 = pneg %p575_p6 }
 0x115   : > { %p581_p1 = pnand %p580_p12, %p576_p4 }
 0x117   : > { %584 = shalt.err (!%p581_p1)
}
 0x118   : > { %432 = dma.vmem_to_hbm [thread:$0]  (%p759_p13), %s809_s30, 64, %s807_s5, %s292_s15  }
 0x119 PF: > { %s318_s20 = sand.u32 1, %s623_s12   ;;  %p870_p8 = scmp.ne.s32.totalorder %s863_s23, 0 }
 0x11a   : > { %p871_p10 = scmp.ge.s32.totalorder %s643_s17, 2  ;;  %s319_s27 = scalar_lea.sflag [#allocation4], %s318_s20 }
 0x11c   : > { %p443_p0 = pnand %p871_p10, %p870_p8 }
 0x11e   : > { %p444_p2 = pneg %p443_p0 }
 0x120   : > { %618 = dma.done.wait (%p444_p2), %s319_s27, 64  }
 0x121   : > { %620 = vsyncadd (%p444_p2), %s319_s27, 4294967232  ;;  %s20_s17 = sadd.s32 1, %s643_s17   ;;  %s872_s12 = smov %s627_s13 }
 0x122   : > { %p17_p3 = scmp.ge.s32.totalorder %s20_s17, 4   ;;  %s873_s13 = smov %s631_s14 }
 0x123   : > { %s874_s14 = smov %s768_s19  ;;  %s875_s15 = smov %s639_s16 }
 0x124   : > { %s876_s16 = smov %s878_s28  ;;  %19 = sbr.rel (!%p17_p3) target bundleno = 7 (0x7), region = 81 }
 0x129   :  { %324 = vsyncpa [#allocation3], 1 }
 0x12a   :  { %326 = vsyncpa [#allocation3 + $0x1], 1 }
 0x12b   :  { %327 = vsyncpa [#allocation6], 1 }
 0x12c   :  { %328 = vsyncpa [#allocation4], 1 }
 0x12d   :  { %330 = vsyncpa [#allocation4 + $0x1], 1 }

</bundles_post_ra>
